<compile_context>
chip_gen: v7x
topology: tpu7x:2x2x1
jax: 0.10.0
libtpu: 0.0.40
codegen_flags: <defaults>
</compile_context>

<pallas_src>
import functools

import jax
import jax.numpy as jnp
from jax.experimental import pallas as pl
from jax.experimental.pallas import tpu as pltpu


def _round_up(a: int, b: int) -> int:
    return ((a + b - 1) // b) * b


def auto_mlp_config():
    """Per-TPU-generation defaults for tm / th / scoped-VMEM limit."""
    kind = ""
    try:
        kind = jax.devices()[0].device_kind.lower()
    except Exception:  # pragma: no cover - defensive, e.g. no devices yet
        pass
    if "v5" in kind and ("lite" in kind or "5e" in kind):
        # v5e: 197 TF/s bf16, ~0.8 TB/s HBM -> compute-bound at modest tm.
        # Spend VMEM on th (fewer accumulator passes / grid steps), not tm.
        return dict(tm=256, th=1024, vmem_limit_bytes=96 * 1024 * 1024)
    if "v6" in kind:
        # v6e: 128 MiB VMEM -> tm=512 halves weight reads vs tm=256.
        return dict(tm=512, th=1024, vmem_limit_bytes=100 * 1024 * 1024)
    if "v7" in kind:
        # v7x: only 64 MiB VMEM per TC -> keep the tile combo modest, but use
        # tm=512 so each TC streams the weights half as often (megacore shards
        # the token axis across 2 TCs, duplicating the weight stream).
        # TODO(synk): stage W1/W2 slabs in VMEM_SHARED/CMEM so one DMA feeds
        # both TCs instead of doubling aggregate HBM weight reads.
        return dict(tm=512, th=512, vmem_limit_bytes=48 * 1024 * 1024)
    # Unknown / older chips: conservative.
    return dict(tm=256, th=512, vmem_limit_bytes=48 * 1024 * 1024)


def mlp_kernel(x_ref, w1_ref, b1_ref, w2_ref, b2_ref, o_ref, acc_ref):
    # x_ref : (tm, Dp)  token tile (VMEM-resident across the hidden/j axis)
    # w1_ref: (Dp, th)  contiguous W1 slab        b1_ref: (1, th)  f32
    # w2_ref: (th, Dp)  contiguous W2 slab        b2_ref: (1, Dp)  f32
    # o_ref : (tm, Dp)  output tile               acc_ref: (tm, Dp) f32 scratch
    j = pl.program_id(1)

    @pl.when(j == 0)
    def _init():
        # Seed the accumulator with the output bias: drops the epilogue add.
        acc_ref[...] = jnp.broadcast_to(b2_ref[...], acc_ref.shape).astype(
            jnp.float32)

    # First matmul (f32 accumulation on the MXU), bias, ReLU for this H slab.
    h = jnp.dot(x_ref[...], w1_ref[...], preferred_element_type=jnp.float32)
    h = jnp.maximum(h + b1_ref[...], 0.0)

    # Second matmul: partial contribution of this H slab to the output tile.
    acc_ref[...] += jnp.dot(h.astype(w2_ref.dtype), w2_ref[...],
                            preferred_element_type=jnp.float32)

    @pl.when(j == pl.num_programs(1) - 1)
    def _finalize():
        o_ref[...] = acc_ref[...].astype(o_ref.dtype)


def prepare_mlp_params(w1, b1, w2, b2, *, th=None, compute_dtype=None):
    """One-time weight preparation (hoisted out of the forward hot path).

    - Pads D and H to lane-aligned multiples (zero padding is exact:
      ReLU(0)=0 so padded H columns / W2 rows contribute nothing).
    - Re-lays W1 into contiguous (Hp//th, Dp, th) slabs so the per-grid-step
      W1 DMA is a single contiguous block instead of Dp strided row-segments.
    - Optionally casts weights to compute_dtype (e.g. bf16 for v6e/v7x MXU
      peak and halved weight HBM traffic); biases stay f32 (added to the f32
      accumulator).

    Returns (w1_slabs, b1p, w2p, b2p).
    """
    if th is None:
        th = auto_mlp_config()["th"]
    D, H = w1.shape
    assert w2.shape == (H, D), "w2 must be [hidden_dim, model_dim]"
    if compute_dtype is not None:
        w1 = w1.astype(compute_dtype)
        w2 = w2.astype(compute_dtype)

    Dp = _round_up(D, 128)
    th = _round_up(max(128, min(th, _round_up(H, 128))), 128)
    Hp = _round_up(H, th)
    nH = Hp // th

    w1p = jnp.pad(w1, ((0, Dp - D), (0, Hp - H)))
    w2p = jnp.pad(w2, ((0, Hp - H), (0, Dp - D)))
    b1p = jnp.pad(b1.reshape(1, -1).astype(jnp.float32), ((0, 0), (0, Hp - H)))
    b2p = jnp.pad(b2.reshape(1, -1).astype(jnp.float32), ((0, 0), (0, Dp - D)))

    # Contiguous per-j slabs: slab j == w1p[:, j*th:(j+1)*th].
    w1_slabs = w1p.reshape(Dp, nH, th).transpose(1, 0, 2)
    return w1_slabs, b1p, w2p, b2p


def mlp_forward(x, w1_slabs, b1p, w2p, b2p, *, tm=None,
                vmem_limit_bytes=None, weight_buffers=2):
    """x: [M, D]. Prepared params from prepare_mlp_params. Returns [M, D].

    tm: token tile (per-generation default; clamped for tiny M).
    weight_buffers: >2 enables deeper pipelining on the W1/W2 slab streams
                    (use 3 if profiling shows exposed DMA; keep 2 on v7x).
    """
    cfg = auto_mlp_config()
    if tm is None:
        tm = cfg["tm"]
    if vmem_limit_bytes is None:
        vmem_limit_bytes = cfg["vmem_limit_bytes"]

    M, D = x.shape
    nH, Dp, th = w1_slabs.shape
    Hp = nH * th
    assert w2p.shape == (Hp, Dp) and b1p.shape == (1, Hp) and b2p.shape == (1, Dp)

    out_dtype = x.dtype
    compute_dtype = w1_slabs.dtype
    x = x.astype(compute_dtype)          # explicit compute dtype (no implicit promotion)

    # Token tile: multiple of 16 (covers bf16 sublane packing); only clamps
    # below the 256-aligned default when M itself is tiny.
    tm = max(16, min(tm, _round_up(M, 16)))
    Mp = _round_up(M, tm)

    if Mp != M or Dp != D:
        x = jnp.pad(x, ((0, Mp - M), (0, Dp - D)))

    n_token_tiles = Mp // tm
    grid = (n_token_tiles, nH)

    # Advisory cost: weights are re-streamed once per token tile.
    w_bytes = (w1_slabs.size * w1_slabs.dtype.itemsize
               + w2p.size * w2p.dtype.itemsize
               + b1p.size * 4 + b2p.size * 4)
    cost = pl.CostEstimate(
        flops=4 * Mp * Dp * Hp,                     # two matmuls, 2*M*D*H each
        transcendentals=0,
        bytes_accessed=(x.size * x.dtype.itemsize
                        + n_token_tiles * w_bytes
                        + Mp * Dp * jnp.dtype(out_dtype).itemsize),
    )

    def _wspec(shape, imap):
        if weight_buffers and weight_buffers > 2:
            return pl.BlockSpec(shape, imap,
                                pipeline_mode=pl.Buffered(weight_buffers))
        return pl.BlockSpec(shape, imap)

    out_p = pl.pallas_call(
        mlp_kernel,
        out_shape=jax.ShapeDtypeStruct((Mp, Dp), out_dtype),
        grid_spec=pltpu.PrefetchScalarGridSpec(
            num_scalar_prefetch=0,
            grid=grid,
            in_specs=[
                pl.BlockSpec((tm, Dp), lambda i, j: (i, 0)),       # x tile (resident over j)
                _wspec((None, Dp, th), lambda i, j: (j, 0, 0)),    # W1 slab (contiguous)
                pl.BlockSpec((1, th), lambda i, j: (0, j)),        # b1 slab
                _wspec((th, Dp), lambda i, j: (j, 0)),             # W2 slab (contiguous)
                pl.BlockSpec((1, Dp), lambda i, j: (0, 0)),        # b2 (grid-invariant)
            ],
            out_specs=pl.BlockSpec((tm, Dp), lambda i, j: (i, 0)),
            scratch_shapes=[pltpu.VMEM((tm, Dp), jnp.float32)],
        ),
        compiler_params=pltpu.CompilerParams(
            dimension_semantics=("parallel", "arbitrary"),
            vmem_limit_bytes=vmem_limit_bytes,
        ),
        cost_estimate=cost,
    )(x, w1_slabs, b1p, w2p, b2p)

    return out_p[:M, :D]


def init_mlp_params(key, model_dim, hidden_dim, dtype=jnp.float32):
    """Deterministic init mirroring nn.Linear's U(-1/sqrt(fan_in), 1/sqrt(fan_in))."""
    k1, k2, k3, k4 = jax.random.split(key, 4)
    lim1 = 1.0 / jnp.sqrt(model_dim)
    lim2 = 1.0 / jnp.sqrt(hidden_dim)
    w1 = jax.random.uniform(k1, (model_dim, hidden_dim), dtype, -lim1, lim1)
    b1 = jax.random.uniform(k2, (1, hidden_dim), dtype, -lim1, lim1)
    w2 = jax.random.uniform(k3, (hidden_dim, model_dim), dtype, -lim2, lim2)
    b2 = jax.random.uniform(k4, (1, model_dim), dtype, -lim2, lim2)
    return w1, b1, w2, b2


if __name__ == "__main__":
    key = jax.random.PRNGKey(0)
    kx, kp = jax.random.split(key)

    batch, seq, model_dim, hidden_dim = 2, 8, 32, 64
    x3 = jax.random.normal(kx, (batch, seq, model_dim), dtype=jnp.float32)
    w1, b1, w2, b2 = init_mlp_params(kp, model_dim, hidden_dim)

    # Flatten leading dims into tokens; feature dim stays last (lane axis).
    x2 = x3.reshape(batch * seq, model_dim)

    # Pure-JAX reference.
    ref = jnp.maximum(x3 @ w1 + b1[0], 0.0) @ w2 + b2[0]

    fwd = jax.jit(mlp_forward)

    # f32 path (tight check). Weight padding/layout done once, outside the hot path.
    params_f32 = prepare_mlp_params(w1, b1, w2, b2)
    out = fwd(x2, *params_f32).reshape(batch, seq, model_dim)
    jax.block_until_ready(out)
    assert jnp.allclose(out, ref, atol=1e-5, rtol=1e-5), "f32 mismatch vs reference"

    # bf16 compute path (MXU-friendly; f32 accumulation) — loose check.
    params_bf16 = prepare_mlp_params(w1, b1, w2, b2, compute_dtype=jnp.bfloat16)
    out_bf16 = fwd(x2, *params_bf16).reshape(batch, seq, model_dim)
    jax.block_until_ready(out_bf16)
    assert jnp.allclose(out_bf16, ref, atol=5e-2, rtol=5e-2), "bf16 mismatch vs reference"

    print("KERNEL_OK")
</pallas_src>

<mosaic_0001>
module attributes {stable_mosaic.version = 11 : i64} {
  func.func @mlp_kernel(%arg0: i32, %arg1: i32, %arg2: memref<16x128xf32, #tpu.memory_space<vmem>>, %arg3: memref<1x128x128xf32, #tpu.memory_space<vmem>>, %arg4: memref<1x128xf32, #tpu.memory_space<vmem>>, %arg5: memref<128x128xf32, #tpu.memory_space<vmem>>, %arg6: memref<1x128xf32, #tpu.memory_space<vmem>>, %arg7: memref<16x128xf32, #tpu.memory_space<vmem>>, %arg8: memref<16x128xf32, #tpu.memory_space<vmem>>) attributes {dimension_semantics = [#tpu.dimension_semantics<parallel>, #tpu.dimension_semantics<arbitrary>], iteration_bounds = array<i64: 1, 1>, scalar_prefetch = 0 : i64, scratch_operands = 1 : i64, tpu.core_type = #tpu.core_type<tc>, window_params = [{transform_indices = @transform_0, window_bounds = array<i64: 16, 128>}, {transform_indices = @transform_1, window_bounds = array<i64: 1, 128, 128>}, {transform_indices = @transform_2, window_bounds = array<i64: 1, 128>}, {transform_indices = @transform_3, window_bounds = array<i64: 128, 128>}, {pipeline_mode = #tpu.pipeline_mode<synchronous>, transform_indices = @transform_4, window_bounds = array<i64: 1, 128>}, {transform_indices = @transform_5, window_bounds = array<i64: 16, 128>}]} {
    %c0_i32 = arith.constant 0 : i32
    %0 = arith.cmpi eq, %arg1, %c0_i32 : i32
    %1 = arith.extui %0 : i1 to i32
    %c0_i32_0 = arith.constant 0 : i32
    %2 = arith.cmpi ne, %1, %c0_i32_0 : i32
    scf.if %2 {
      %c0_17 = arith.constant 0 : index
      %c0_18 = arith.constant 0 : index
      %20 = vector.load %arg6[%c0_17, %c0_18] : memref<1x128xf32, #tpu.memory_space<vmem>>, vector<1x128xf32>
      %21 = vector.shape_cast %20 : vector<1x128xf32> to vector<1x128xf32>
      %22 = vector.broadcast %21 : vector<1x128xf32> to vector<16x128xf32>
      %c0_19 = arith.constant 0 : index
      %c0_20 = arith.constant 0 : index
      %23 = vector.load %arg8[%c0_19, %c0_20] : memref<16x128xf32, #tpu.memory_space<vmem>>, vector<16x128xf32>
      tpu.vector_store %arg8[%c0_19, %c0_20], %22 {strides = array<i32>} : memref<16x128xf32, #tpu.memory_space<vmem>>, vector<16x128xf32>,
    } else {
    }
    %c0 = arith.constant 0 : index
    %c0_1 = arith.constant 0 : index
    %3 = vector.load %arg2[%c0, %c0_1] : memref<16x128xf32, #tpu.memory_space<vmem>>, vector<16x128xf32>
    %c0_2 = arith.constant 0 : index
    %c0_3 = arith.constant 0 : index
    %c0_4 = arith.constant 0 : index
    %4 = vector.load %arg3[%c0_2, %c0_3, %c0_4] : memref<1x128x128xf32, #tpu.memory_space<vmem>>, vector<1x128x128xf32>
    %5 = vector.shape_cast %4 : vector<1x128x128xf32> to vector<128x128xf32>
    %cst = arith.constant dense<0.000000e+00> : vector<16x128xf32>
    %6 = tpu.matmul %3, %5, %cst {dimension_numbers = #tpu.dot_dimension_numbers<[1], [0], [0], [1], [0, 0, 1, 1], [], []>} : vector<16x128xf32>, vector<128x128xf32>, vector<16x128xf32> -> vector<16x128xf32>
    %c0_5 = arith.constant 0 : index
    %c0_6 = arith.constant 0 : index
    %7 = vector.load %arg4[%c0_5, %c0_6] : memref<1x128xf32, #tpu.memory_space<vmem>>, vector<1x128xf32>
    %8 = vector.broadcast %7 : vector<1x128xf32> to vector<16x128xf32>
    %9 = arith.addf %6, %8 : vector<16x128xf32>
    %cst_7 = arith.constant 0.000000e+00 : f32
    %10 = vector.broadcast %cst_7 : f32 to vector<16x128xf32>
    %11 = arith.maximumf %9, %10 : vector<16x128xf32>
    %c0_8 = arith.constant 0 : index
    %c0_9 = arith.constant 0 : index
    %12 = vector.load %arg8[%c0_8, %c0_9] : memref<16x128xf32, #tpu.memory_space<vmem>>, vector<16x128xf32>
    %c0_10 = arith.constant 0 : index
    %c0_11 = arith.constant 0 : index
    %13 = vector.load %arg5[%c0_10, %c0_11] : memref<128x128xf32, #tpu.memory_space<vmem>>, vector<128x128xf32>
    %cst_12 = arith.constant dense<0.000000e+00> : vector<16x128xf32>
    %14 = tpu.matmul %11, %13, %cst_12 {dimension_numbers = #tpu.dot_dimension_numbers<[1], [0], [0], [1], [0, 0, 1, 1], [], []>} : vector<16x128xf32>, vector<128x128xf32>, vector<16x128xf32> -> vector<16x128xf32>
    %15 = arith.addf %12, %14 : vector<16x128xf32>
    %c0_13 = arith.constant 0 : index
    %c0_14 = arith.constant 0 : index
    %16 = vector.load %arg8[%c0_13, %c0_14] : memref<16x128xf32, #tpu.memory_space<vmem>>, vector<16x128xf32>
    tpu.vector_store %arg8[%c0_13, %c0_14], %15 {strides = array<i32>} : memref<16x128xf32, #tpu.memory_space<vmem>>, vector<16x128xf32>,
    %c0_i32_15 = arith.constant 0 : i32
    %17 = arith.cmpi eq, %arg1, %c0_i32_15 : i32
    %18 = arith.extui %17 : i1 to i32
    %c0_i32_16 = arith.constant 0 : i32
    %19 = arith.cmpi ne, %18, %c0_i32_16 : i32
    scf.if %19 {
      %c0_17 = arith.constant 0 : index
      %c0_18 = arith.constant 0 : index
      %20 = vector.load %arg8[%c0_17, %c0_18] : memref<16x128xf32, #tpu.memory_space<vmem>>, vector<16x128xf32>
      %c0_19 = arith.constant 0 : index
      %c0_20 = arith.constant 0 : index
      %21 = vector.load %arg7[%c0_19, %c0_20] : memref<16x128xf32, #tpu.memory_space<vmem>>, vector<16x128xf32>
      tpu.vector_store %arg7[%c0_19, %c0_20], %20 {strides = array<i32>} : memref<16x128xf32, #tpu.memory_space<vmem>>, vector<16x128xf32>,
    } else {
    }
    return
  }
  func.func @transform_0(%arg0: i32, %arg1: i32) -> (i32, i32) {
    %c0_i32 = arith.constant 0 : i32
    %c0_i32_0 = arith.constant 0 : i32
    return %arg0, %c0_i32 : i32, i32
  }
  func.func @transform_1(%arg0: i32, %arg1: i32) -> (i32, i32, i32) {
    %c0_i32 = arith.constant 0 : i32
    %c0_i32_0 = arith.constant 0 : i32
    %c0_i32_1 = arith.constant 0 : i32
    return %arg1, %c0_i32, %c0_i32_0 : i32, i32, i32
  }
  func.func @transform_2(%arg0: i32, %arg1: i32) -> (i32, i32) {
    %c0_i32 = arith.constant 0 : i32
    %c0_i32_0 = arith.constant 0 : i32
    return %c0_i32, %arg1 : i32, i32
  }
  func.func @transform_3(%arg0: i32, %arg1: i32) -> (i32, i32) {
    %c0_i32 = arith.constant 0 : i32
    %c0_i32_0 = arith.constant 0 : i32
    return %arg1, %c0_i32 : i32, i32
  }
  func.func @transform_4(%arg0: i32, %arg1: i32) -> (i32, i32) {
    %c0_i32 = arith.constant 0 : i32
    %c0_i32_0 = arith.constant 0 : i32
    %c0_i32_1 = arith.constant 0 : i32
    return %c0_i32, %c0_i32_0 : i32, i32
  }
  func.func @transform_5(%arg0: i32, %arg1: i32) -> (i32, i32) {
    %c0_i32 = arith.constant 0 : i32
    %c0_i32_0 = arith.constant 0 : i32
    return %arg0, %c0_i32 : i32, i32
  }
}

</mosaic_0001>

<bundles_post_ra>
// kernel: mlp_forward.1
= control target key start
LH: loop header
LB: loop body
LE: loop exit
PB: predicated region body
PF: predicated region fallthrough
CT: control target
= control target key end

     0   :  { %10 = vsyncpa [#allocation4], 0  ;;  %s627_s0 = inlined_call_operand.vmem [shape: f32[16,128], index: 0, kind: input, shape index: {}]   ;;  %s628_s1 = inlined_call_operand.hbm [shape: f32[1,128,128], index: 1, kind: input, shape index: {}]   ;;  %s629_s2 = inlined_call_operand.vmem [shape: f32[1,128], index: 2, kind: input, shape index: {}]   ;;  %s630_s3 = inlined_call_operand.hbm [shape: f32[128,128], index: 3, kind: input, shape index: {}]   ;;  %s631_s4 = inlined_call_operand.vmem [shape: f32[1,128], index: 4, kind: input, shape index: {}]   ;;  %s632_s5 = inlined_call_operand.hbm [shape: f32[16,128], index: 5, kind: output, shape index: {}]  }
   0x1   :  { %11 = vsyncpa [#allocation7], 0 }
   0x2   :  { %12 = vsyncpa [#allocation5], 0  ;;  %s535_s18 = smov [#allocation3]   ;;  %s463_s22 = scalar_lea.hbm %s628_s1, 2048 }
   0x3   :  { %s20_s19 = sshll.u32 %s535_s18, 4  ;;  %p464_p0 = scmp.ne.s32.totalorder %s628_s1, %s463_s22  ;;  %s21_s19 = int_to_ptr.vmem [resolvable:$true] %s20_s19 }
   0x4   :  { %p467_p1 = scmp.lt.u32.totalorder %s463_s22, %s628_s1 }
   0x6   :  { %p469_p2 = pnand %p467_p1, %p464_p0 }
   0x8   :  { %472 = shalt.err (!%p469_p2)
}
   0x9   :  { %s473_s27 = scalar_lea.vmem %s21_s19, 2048  ;;  %p478_p4 = scmp.lt.s32.totalorder %s21_s19, %s21_s19 }
   0xa   :  { %p474_p3 = scmp.ne.s32.totalorder %s21_s19, %s473_s27  ;;  %p479_p5 = scmp.lt.s32.totalorder %s473_s27, %s473_s27 }
   0xc   :  { %p480_p6 = por %p479_p5, %p478_p4 }
   0xe   :  { %p481_p7 = pnand %p480_p6, %p474_p3 }
  0x10   :  { %484 = shalt.err (!%p481_p7)
}
  0x11   :  { %s536_s28 = smov 128   ;;  %s537_s29 = smov 8  }
  0x12   :  { %26 = dma.hbm_to_vmem [thread:$0]  %s628_s1, 2048, %s21_s19, [#allocation4], %s536_s28, %s536_s28, %s537_s29  }
  0x13   :  { %s538_s7 = smov [#allocation6]   ;;  %s485_s11 = scalar_lea.hbm %s630_s3, 2048 }
  0x14   :  { %s34_s8 = sshll.u32 %s538_s7, 4  ;;  %p486_p8 = scmp.ne.s32.totalorder %s630_s3, %s485_s11  ;;  %s35_s8 = int_to_ptr.vmem [resolvable:$true] %s34_s8 }
  0x15   :  { %p489_p9 = scmp.lt.u32.totalorder %s485_s11, %s630_s3 }
  0x17   :  { %p491_p10 = pnand %p489_p9, %p486_p8 }
  0x19   :  { %494 = shalt.err (!%p491_p10)
}
  0x1a   :  { %s495_s16 = scalar_lea.vmem %s35_s8, 2048  ;;  %p500_p12 = scmp.lt.s32.totalorder %s35_s8, %s35_s8 }
  0x1b   :  { %p496_p11 = scmp.ne.s32.totalorder %s35_s8, %s495_s16  ;;  %p501_p13 = scmp.lt.s32.totalorder %s495_s16, %s495_s16 }
  0x1d   :  { %p502_p0 = por %p501_p13, %p500_p12 }
  0x1f   :  { %p503_p1 = pnand %p502_p0, %p496_p11 }
  0x21   :  { %506 = shalt.err (!%p503_p1)
}
  0x22   :  { %40 = dma.hbm_to_vmem [thread:$0]  %s630_s3, 2048, %s35_s8, [#allocation7], %s536_s28, %s536_s28, %s537_s29  }
  0x23   :  { %529 = dma.done.wait [#allocation4], 2048  }
  0x24   :  { %530 = vsyncadd [#allocation4], 4294965248 }
  0x25   :  { %531 = dma.done.wait [#allocation7], 2048  }
  0x26   :  { %532 = vsyncadd [#allocation7], 4294965248  ;;  %v64_v0 = vld [vmem:[#allocation3] sm:$0xff]  ;;  %v65_v1 = vld [vmem:[#allocation3 + $0x8] sm:$0xff]  ;;  %s539_s24 = smov [#allocation8]  }
  0x27   :  { %v66_v2 = vld [vmem:[#allocation3 + $0x10] sm:$0xff]  ;;  %v394_v3 = vpack.c.bf16 %v65_v1, %v64_v0  ;;  %v67_v4 = vld [vmem:[#allocation3 + $0x18] sm:$0xff]  ;;  %v68_v6 = vld [vmem:[#allocation3 + $0x20] sm:$0xff]  ;;  %s273_s25 = sshll.u32 %s539_s24, 4  ;;  %s274_s25 = int_to_ptr.vmem [resolvable:$true] %s273_s25 }
  0x28   :  { %v398_v5 = vpack.c.bf16 %v67_v4, %v66_v2  ;;  %v69_v7 = vld [vmem:[#allocation3 + $0x28] sm:$0xff]  ;;  %v70_v9 = vld [vmem:[#allocation3 + $0x30] sm:$0xff]  ;;  %v71_v10 = vld [vmem:[#allocation3 + $0x38] sm:$0xff]  ;;  %p512_p3 = scmp.lt.s32.totalorder %s274_s25, %s274_s25 }
  0x29   :  { %395 = vmatprep.subr.bf16.mxu0 %v394_v3  ;;  %v402_v8 = vpack.c.bf16 %v69_v7, %v68_v6  ;;  %v62_v11 = vld [vmem:[%s627_s0] sm:$0xff]  ;;  %v166_v12 = vld [vmem:[#allocation6] sm:$0xff]  ;;  %v167_v13 = vld [vmem:[#allocation6 + $0x8] sm:$0xff]  ;;  %v406_v20 = vpack.c.bf16 %v71_v10, %v70_v9 }
  0x2a   :  { %397 = vmatpush3.bf16.msra.mxu0 %v394_v3  ;;  %356 = vmatprep.mubr.f32.mxu0 %v62_v11  ;;  %v168_v14 = vld [vmem:[#allocation6 + $0x10] sm:$0xff]  ;;  %v426_v15 = vpack.c.bf16 %v167_v13, %v166_v12  ;;  %v169_v16 = vld [vmem:[#allocation6 + $0x18] sm:$0xff]  ;;  %v170_v18 = vld [vmem:[#allocation6 + $0x20] sm:$0xff] }
  0x2b   :  { %399 = vmatprep.subr.bf16.mxu0 %v398_v5  ;;  %v430_v17 = vpack.c.bf16 %v169_v16, %v168_v14  ;;  %v171_v19 = vld [vmem:[#allocation6 + $0x28] sm:$0xff]  ;;  %v72_v21 = vld [vmem:[#allocation3 + $0x40] sm:$0xff]  ;;  %v172_v24 = vld [vmem:[#allocation6 + $0x30] sm:$0xff] }
  0x2c   :  { %427 = vmatprep.subr.bf16.mxu1 %v426_v15  ;;  %v73_v22 = vld [vmem:[#allocation3 + $0x48] sm:$0xff]  ;;  %v434_v23 = vpack.c.bf16 %v171_v19, %v170_v18  ;;  %v173_v25 = vld [vmem:[#allocation6 + $0x38] sm:$0xff]  ;;  %v74_v27 = vld [vmem:[#allocation3 + $0x50] sm:$0xff] }
  0x2d   :  { %429 = vmatpush3.bf16.msra.mxu1 %v426_v15  ;;  %v410_v26 = vpack.c.bf16 %v73_v22, %v72_v21  ;;  %v75_v28 = vld [vmem:[#allocation3 + $0x58] sm:$0xff]  ;;  %v438_v29 = vpack.c.bf16 %v173_v25, %v172_v24  ;;  %v174_v30 = vld [vmem:[#allocation6 + $0x40] sm:$0xff]  ;;  %v175_v31 = vld [vmem:[#allocation6 + $0x48] sm:$0xff] }
  0x2e   :  { %401 = vmatpush3.bf16.msra.mxu0 %v398_v5  ;;  %431 = vmatprep.subr.bf16.mxu1 %v430_v17  ;;  %v414_v32 = vpack.c.bf16 %v75_v28, %v74_v27  ;;  %v76_v33 = vld [vmem:[#allocation3 + $0x60] sm:$0xff]  ;;  %v77_v34 = vld [vmem:[#allocation3 + $0x68] sm:$0xff]  ;;  %v442_v35 = vpack.c.bf16 %v175_v31, %v174_v30  ;;  %v176_v36 = vld [vmem:[#allocation6 + $0x50] sm:$0xff] }
  0x2f   :  { %403 = vmatprep.subr.bf16.mxu0 %v402_v8  ;;  %v177_v37 = vld [vmem:[#allocation6 + $0x58] sm:$0xff]  ;;  %v418_v38 = vpack.c.bf16 %v77_v34, %v76_v33  ;;  %v78_v39 = vld [vmem:[#allocation3 + $0x70] sm:$0xff]  ;;  %v178_v42 = vld [vmem:[#allocation6 + $0x60] sm:$0xff] }
  0x30   :  { %v79_v40 = vld [vmem:[#allocation3 + $0x78] sm:$0xff]  ;;  %v446_v41 = vpack.c.bf16 %v177_v37, %v176_v36  ;;  %v179_v43 = vld [vmem:[#allocation6 + $0x68] sm:$0xff]  ;;  %v180_v47 = vld [vmem:[#allocation6 + $0x70] sm:$0xff] }
  0x31   :  { %433 = vmatpush3.bf16.msra.mxu1 %v430_v17  ;;  %v422_v44 = vpack.c.bf16 %v79_v40, %v78_v39  ;;  %v450_v45 = vpack.c.bf16 %v179_v43, %v178_v42  ;;  %v63_v46 = vld [vmem:[%s627_s0 + $0x8] sm:$0xff]  ;;  %v287_v50 = vld [vmem:[%s629_s2] ss:$0 sm:$0xff]  ;;  %s507_s2 = scalar_lea.vmem %s274_s25, 256 }
  0x32   :  { %405 = vmatpush3.bf16.msra.mxu0 %v402_v8  ;;  %435 = vmatprep.subr.bf16.mxu1 %v434_v23  ;;  %v181_v48 = vld [vmem:[#allocation6 + $0x78] sm:$0xff]  ;;  %v286_v57 = vld [vmem:[%s631_s4] ss:$0 sm:$0xff]  ;;  %p508_p2 = scmp.ne.s32.totalorder %s274_s25, %s507_s2  ;;  %p513_p4 = scmp.lt.s32.totalorder %s507_s2, %s507_s2 }
  0x33   :  { %407 = vmatprep.subr.bf16.mxu0 %v406_v20  ;;  %v454_v49 = vpack.c.bf16 %v181_v48, %v180_v47 }
  0x34   :  { %p514_p5 = por %p513_p4, %p512_p3 }
  0x35   :  { %437 = vmatpush3.bf16.msra.mxu1 %v434_v23 }
  0x36   :  { %409 = vmatpush3.bf16.msra.mxu0 %v406_v20  ;;  %439 = vmatprep.subr.bf16.mxu1 %v438_v29  ;;  %p515_p6 = pnand %p514_p5, %p508_p2 }
  0x37   :  { %411 = vmatprep.subr.bf16.mxu0 %v410_v26 }
  0x39   :  { %441 = vmatpush3.bf16.msra.mxu1 %v438_v29 }
  0x3a   :  { %413 = vmatpush3.bf16.msra.mxu0 %v410_v26  ;;  %443 = vmatprep.subr.bf16.mxu1 %v442_v35 }
  0x3b   :  { %415 = vmatprep.subr.bf16.mxu0 %v414_v32 }
  0x3d   :  { %445 = vmatpush3.bf16.msra.mxu1 %v442_v35 }
  0x3e   :  { %417 = vmatpush3.bf16.msra.mxu0 %v414_v32  ;;  %447 = vmatprep.subr.bf16.mxu1 %v446_v41 }
  0x3f   :  { %419 = vmatprep.subr.bf16.mxu0 %v418_v38 }
  0x41   :  { %449 = vmatpush3.bf16.msra.mxu1 %v446_v41 }
  0x42   :  { %421 = vmatpush3.bf16.msra.mxu0 %v418_v38  ;;  %451 = vmatprep.subr.bf16.mxu1 %v450_v45 }
  0x43   :  { %423 = vmatprep.subr.bf16.mxu0 %v422_v44 }
  0x45   :  { %453 = vmatpush3.bf16.msra.mxu1 %v450_v45 }
  0x46   :  { %425 = vmatpush3.bf16.msra.mxu0 %v422_v44  ;;  %455 = vmatprep.subr.bf16.mxu1 %v454_v49 }
  0x49   :  { %357 = vmatmul.mubr.f32.vlgmr.msra.gmra.mrb[0].mxu0 %v63_v46  ;;  %457 = vmatpush3.bf16.msra.mxu1 %v454_v49 }
 0x11c   :  { %v358_v51 = vpop.f32.mrb[0].mxu0 }
 0x11d   :  { %v159_v52 = vadd.f32 %v358_v51, %v287_v50  ;;  %v153_v53 = vpop.f32.mrb[1].mxu0 }
 0x11e   :  { %v154_v54 = vadd.f32 %v287_v50, %v153_v53 }
 0x11f   :  { %v163_v56 = vmax.f32 %v159_v52, 0.0 }
 0x120   :  { %v162_v55 = vmax.f32 %v154_v54, 0.0 }
 0x122   :  { %391 = vmatprep.mubr.f32.mxu1 %v162_v55 }
 0x123   :  { %392 = vmatmul.mubr.f32.vlgmr.msra.gmra.mrb[0].mxu1 %v163_v56 }
 0x1f6   :  { %v393_v58 = vpop.f32.mrb[0].mxu1 }
 0x1f7   :  { %v258_v59 = vadd.f32 %v393_v58, %v286_v57  ;;  %v248_v60 = vpop.f32.mrb[1].mxu1 }
 0x1f8   :  { %v257_v61 = vadd.f32 %v286_v57, %v248_v60 }
 0x1f9   :  { %267 = vst [vmem:[#allocation8 + $0x8] sm:$0xff] %v258_v59 }
 0x1fa   :  { %266 = vst [vmem:[#allocation8] sm:$0xff] %v257_v61 }
 0x1fb   :  { %518 = shalt.err (!%p515_p6)
}
 0x1fc   :  { %s519_s4 = scalar_lea.hbm %s632_s5, 256 }
 0x1fd   :  { %p520_p7 = scmp.ne.s32.totalorder %s632_s5, %s519_s4  ;;  %p523_p8 = scmp.lt.u32.totalorder %s519_s4, %s632_s5 }
 0x1ff   :  { %p525_p9 = pnand %p523_p8, %p520_p7 }
 0x201   :  { %528 = shalt.err (!%p525_p9)
}
 0x202   :  { %279 = dma.vmem_to_hbm [thread:$0]  %s274_s25, 256, %s632_s5, [#allocation5], %s536_s28, %s536_s28, %s537_s29  }
 0x203   :  { %533 = dma.done.wait [#allocation5], 256  }
 0x204   :  { %534 = vsyncadd [#allocation5], 4294967040 }
 0x205   :  { %283 = vsyncpa [#allocation4], 1 }
 0x206   :  { %284 = vsyncpa [#allocation7], 1 }
 0x207   :  { %285 = vsyncpa [#allocation5], 1 }

</bundles_post_ra>
